<compile_context>
chip_gen: v6e
topology: v6e:2x2x1
jax: 0.10.0
libtpu: 0.0.40
codegen_flags: <defaults>
</compile_context>

<pallas_src>
import jax
import jax.numpy as jnp
from jax.experimental import pallas as pl
from jax.experimental.pallas import tpu as pltpu


# ----------------------------- Pallas kernel --------------------------------
def _ans_att_seq_kernel(
    emb_ref,      # (B, W)    compute dtype
    seq_ref,      # (B, T, H) compute dtype
    h0_ref,       # (B, H)    f32
    wtext_ref,    # (W, A)    compute dtype
    wvis_ref,     # (H, A)    compute dtype
    batt_ref,     # (1, A)    f32   (b_text + b_vis pre-summed)
    watt_ref,     # (1, A)    f32   (attention scoring vector)
    wgie_ref,     # (W, 3H)   compute dtype  (transform folded, embed part)
    wgia_ref,     # (H, 3H)   compute dtype  (transform folded, attended part)
    bgi_ref,      # (1, 3H)   f32   (b_transform folded + b_ih)
    whh_ref,      # (H, 3H)   compute dtype
    bhh_ref,      # (1, 3H)   f32
    wout_ref,     # (H, V)    compute dtype
    bout_ref,     # (1, V)    f32
    out_ref,      # (B, V+H)  f32   [logits | h_new]
):
    f32 = jnp.float32
    B, T, H = seq_ref.shape
    cdt = wgie_ref.dtype                        # MXU operand dtype (f32 / bf16)

    emb = emb_ref[...]                          # (B, W)
    seq = seq_ref[...]                          # (B, T, H)
    h = h0_ref[...]                             # (B, H) f32

    # ---- TempAttention: additive tanh attention over the T axis ------------
    q = jnp.dot(emb, wtext_ref[...], preferred_element_type=f32)          # (B, A)
    k = jnp.dot(seq.reshape(B * T, H), wvis_ref[...],
                preferred_element_type=f32).reshape(B, T, -1)             # (B, T, A)
    u = jnp.tanh(k + q[:, None, :] + batt_ref[...][None])                 # (B, T, A)
    e = jnp.sum(u * watt_ref[...][None], axis=-1)                         # (B, T)
    e_max = jnp.max(e, axis=-1, keepdims=True)
    p = jnp.exp(e - e_max)
    alpha = p / jnp.sum(p, axis=-1, keepdims=True)                        # (B, T)
    att = jnp.sum(alpha[:, :, None] * seq.astype(f32), axis=1)            # (B, H)

    # ---- GRU step (transform Linear pre-folded into input-gate weights) ----
    # gi = [gi_r | gi_z | gi_n], gh = [gh_r | gh_z | gh_n]   (PyTorch order)
    gi = (jnp.dot(emb, wgie_ref[...], preferred_element_type=f32)
          + jnp.dot(att.astype(cdt), wgia_ref[...], preferred_element_type=f32)
          + bgi_ref[...])                                                 # (B, 3H)
    gh = (jnp.dot(h.astype(cdt), whh_ref[...], preferred_element_type=f32)
          + bhh_ref[...])                                                 # (B, 3H)
    r = jax.nn.sigmoid(gi[:, :H] + gh[:, :H])
    z = jax.nn.sigmoid(gi[:, H:2 * H] + gh[:, H:2 * H])
    n = jnp.tanh(gi[:, 2 * H:] + r * gh[:, 2 * H:])
    h_new = (1.0 - z) * n + z * h                                         # (B, H) f32

    # ---- output projection; single lane-dense store of [logits | h_new] ----
    logits = (jnp.dot(h_new.astype(cdt), wout_ref[...],
                      preferred_element_type=f32) + bout_ref[...])        # (B, V)
    out_ref[...] = jnp.concatenate([logits, h_new], axis=-1)


# --------------------- one-time parameter packing ---------------------------
def pack_ans_att_seq_params(params, compute_dtype=jnp.bfloat16):
    """Pre-transpose / fuse all weights ONCE (call at parameter-load time)."""
    f32 = jnp.float32
    W = params["w_att_text"].shape[1]
    w_ih_T = params["w_ih"].T.astype(f32)                  # (H, 3H)
    wt_T = params["w_transform"].T.astype(f32)             # (W+H, H)
    return {
        "embedding": params["embedding"],                                  # (Vocab, W)
        # attention
        "w_text_T": params["w_att_text"].T.astype(compute_dtype),          # (W, A)
        "w_vis_T": params["w_att_vis"].T.astype(compute_dtype),            # (H, A)
        "b_att_qk": (params["b_att_text"]
                     + params["b_att_vis"])[None, :].astype(f32),          # (1, A)
        "w_att_row": params["w_att_score"].astype(f32),                    # (1, A)
        # transform folded into GRU input gates
        "w_gi_e": (wt_T[:W] @ w_ih_T).astype(compute_dtype),               # (W, 3H)
        "w_gi_a": (wt_T[W:] @ w_ih_T).astype(compute_dtype),               # (H, 3H)
        "b_gi": (params["b_transform"][None, :] @ w_ih_T
                 + params["b_ih"][None, :]).astype(f32),                   # (1, 3H)
        # GRU hidden gates
        "w_hh_T": params["w_hh"].T.astype(compute_dtype),                  # (H, 3H)
        "b_hh": params["b_hh"][None, :].astype(f32),                       # (1, 3H)
        # output projection
        "w_out_T": params["w_out"].T.astype(compute_dtype),                # (H, V)
        "b_out": params["b_out"][None, :].astype(f32),                     # (1, V)
    }


# ------------------------------- forward ------------------------------------
def ans_att_seq_forward(packed, seq_outs, hidden, ans_idx):
    """
    seq_outs: (B, T, H) f32    hidden: (1, B, H) f32    ans_idx: (B,) int32
    returns (logits (B, V), hidden' (1, B, H))
    """
    B, T, H = seq_outs.shape
    V = packed["w_out_T"].shape[1]
    cdt = packed["w_out_T"].dtype

    # glue: embedding row gather (XLA); cast MXU operands to compute dtype
    emb = packed["embedding"][ans_idx].astype(cdt)          # (B, W)
    seq_c = seq_outs.astype(cdt)                            # (B, T, H)
    h0 = hidden[0].astype(jnp.float32)                      # (B, H)

    vmem = pl.BlockSpec(memory_space=pltpu.MemorySpace.VMEM)
    out = pl.pallas_call(
        _ans_att_seq_kernel,
        out_shape=jax.ShapeDtypeStruct((B, V + H), jnp.float32),
        in_specs=[vmem] * 14,
        out_specs=vmem,
    )(
        emb, seq_c, h0,
        packed["w_text_T"], packed["w_vis_T"], packed["b_att_qk"], packed["w_att_row"],
        packed["w_gi_e"], packed["w_gi_a"], packed["b_gi"],
        packed["w_hh_T"], packed["b_hh"],
        packed["w_out_T"], packed["b_out"],
    )

    logits = out[:, :V]
    h_new = out[:, V:]
    return logits, h_new[None, :, :]


# ----------------------- pure-JAX reference (for checking) ------------------
def ans_att_seq_reference(params, seq_outs, hidden, ans_idx):
    H = hidden.shape[-1]
    emb = params["embedding"][ans_idx]
    # TempAttention
    q = emb @ params["w_att_text"].T + params["b_att_text"]          # (B, A)
    k = seq_outs @ params["w_att_vis"].T + params["b_att_vis"]       # (B, T, A)
    u = jnp.tanh(q[:, None, :] + k)
    e = jnp.einsum("bta,a->bt", u, params["w_att_score"][0])
    alpha = jax.nn.softmax(e, axis=-1)
    att = jnp.einsum("bt,bth->bh", alpha, seq_outs)
    # transform
    x = jnp.concatenate([emb, att], axis=-1)
    x = x @ params["w_transform"].T + params["b_transform"]
    # GRU single step (PyTorch gate order r, z, n)
    h = hidden[0]
    gi = x @ params["w_ih"].T + params["b_ih"]
    gh = h @ params["w_hh"].T + params["b_hh"]
    r = jax.nn.sigmoid(gi[:, :H] + gh[:, :H])
    z = jax.nn.sigmoid(gi[:, H:2 * H] + gh[:, H:2 * H])
    n = jnp.tanh(gi[:, 2 * H:] + r * gh[:, 2 * H:])
    h_new = (1.0 - z) * n + z * h
    logits = h_new @ params["w_out"].T + params["b_out"]
    return logits, h_new[None]


if __name__ == "__main__":
    vocab_size = 64
    dim_hidden = 32
    dim_word = 32
    att_hidden = dim_hidden // 2
    seq_len = 8
    batch = 4

    key = jax.random.PRNGKey(0)
    keys = jax.random.split(key, 17)

    def xavier(k, shape):
        fan_out, fan_in = shape
        std = (2.0 / (fan_in + fan_out)) ** 0.5
        return std * jax.random.normal(k, shape, dtype=jnp.float32)

    params = {
        # nn.Embedding.from_pretrained(glove) -> synthetic deterministic matrix
        "embedding": 0.1 * jax.random.normal(keys[0], (vocab_size, dim_word), jnp.float32),
        # TempAttention(dim_word, dim_hidden, dim_hidden // 2)
        "w_att_text": xavier(keys[1], (att_hidden, dim_word)),
        "b_att_text": 0.01 * jax.random.normal(keys[2], (att_hidden,), jnp.float32),
        "w_att_vis": xavier(keys[3], (att_hidden, dim_hidden)),
        "b_att_vis": 0.01 * jax.random.normal(keys[4], (att_hidden,), jnp.float32),
        "w_att_score": xavier(keys[5], (1, att_hidden)),
        # transform: Linear(dim_word + dim_hidden -> dim_hidden)
        "w_transform": xavier(keys[6], (dim_hidden, dim_word + dim_hidden)),
        "b_transform": 0.01 * jax.random.normal(keys[7], (dim_hidden,), jnp.float32),
        # GRU layer 0 weights (PyTorch layout (3H, in), gate order r, z, n)
        "w_ih": 0.1 * jax.random.normal(keys[8], (3 * dim_hidden, dim_hidden), jnp.float32),
        "w_hh": 0.1 * jax.random.normal(keys[9], (3 * dim_hidden, dim_hidden), jnp.float32),
        "b_ih": 0.01 * jax.random.normal(keys[10], (3 * dim_hidden,), jnp.float32),
        "b_hh": 0.01 * jax.random.normal(keys[11], (3 * dim_hidden,), jnp.float32),
        # out: Linear(H -> V)
        "w_out": xavier(keys[12], (vocab_size, dim_hidden)),
        "b_out": 0.01 * jax.random.normal(keys[13], (vocab_size,), jnp.float32),
    }

    seq_outs = jax.random.normal(keys[14], (batch, seq_len, dim_hidden), jnp.float32)
    hidden = jax.random.normal(keys[15], (1, batch, dim_hidden), jnp.float32)
    ans_idx = jax.random.randint(keys[16], (batch,), 0, vocab_size, dtype=jnp.int32)

    ref_logits, ref_h = ans_att_seq_reference(params, seq_outs, hidden, ans_idx)

    fwd = jax.jit(ans_att_seq_forward)

    # exact f32 path, and bf16 MXU-operand path (v6e/v7x); gate math is f32 in both.
    for cdt, tol in ((jnp.float32, 1e-4), (jnp.bfloat16, 5e-2)):
        packed = pack_ans_att_seq_params(params, compute_dtype=cdt)
        logits, h_new = fwd(packed, seq_outs, hidden, ans_idx)
        logits = jax.block_until_ready(logits)
        h_new = jax.block_until_ready(h_new)
        assert logits.shape == (batch, vocab_size)
        assert h_new.shape == (1, batch, dim_hidden)
        assert jnp.allclose(logits, ref_logits, atol=tol, rtol=tol), f"logits mismatch ({cdt})"
        assert jnp.allclose(h_new, ref_h, atol=tol, rtol=tol), f"hidden mismatch ({cdt})"

    print("KERNEL_OK")
</pallas_src>

<mosaic_0001>
module attributes {stable_mosaic.version = 11 : i64} {
  func.func @_ans_att_seq_kernel(%arg0: memref<4x32xf32, #tpu.memory_space<vmem>>, %arg1: memref<4x8x32xf32, #tpu.memory_space<vmem>>, %arg2: memref<4x32xf32, #tpu.memory_space<vmem>>, %arg3: memref<32x16xf32, #tpu.memory_space<vmem>>, %arg4: memref<32x16xf32, #tpu.memory_space<vmem>>, %arg5: memref<1x16xf32, #tpu.memory_space<vmem>>, %arg6: memref<1x16xf32, #tpu.memory_space<vmem>>, %arg7: memref<32x96xf32, #tpu.memory_space<vmem>>, %arg8: memref<32x96xf32, #tpu.memory_space<vmem>>, %arg9: memref<1x96xf32, #tpu.memory_space<vmem>>, %arg10: memref<32x96xf32, #tpu.memory_space<vmem>>, %arg11: memref<1x96xf32, #tpu.memory_space<vmem>>, %arg12: memref<32x64xf32, #tpu.memory_space<vmem>>, %arg13: memref<1x64xf32, #tpu.memory_space<vmem>>, %arg14: memref<4x96xf32, #tpu.memory_space<vmem>>) attributes {dimension_semantics = [], scalar_prefetch = 0 : i64, scratch_operands = 0 : i64, tpu.core_type = #tpu.core_type<tc>} {
    %c0 = arith.constant 0 : index
    %c0_0 = arith.constant 0 : index
    %0 = vector.load %arg0[%c0, %c0_0] : memref<4x32xf32, #tpu.memory_space<vmem>>, vector<4x32xf32>
    %c0_1 = arith.constant 0 : index
    %c0_2 = arith.constant 0 : index
    %c0_3 = arith.constant 0 : index
    %1 = vector.load %arg1[%c0_1, %c0_2, %c0_3] : memref<4x8x32xf32, #tpu.memory_space<vmem>>, vector<4x8x32xf32>
    %c0_4 = arith.constant 0 : index
    %c0_5 = arith.constant 0 : index
    %2 = vector.load %arg2[%c0_4, %c0_5] : memref<4x32xf32, #tpu.memory_space<vmem>>, vector<4x32xf32>
    %c0_6 = arith.constant 0 : index
    %c0_7 = arith.constant 0 : index
    %3 = vector.load %arg3[%c0_6, %c0_7] : memref<32x16xf32, #tpu.memory_space<vmem>>, vector<32x16xf32>
    %cst = arith.constant dense<0.000000e+00> : vector<4x16xf32>
    %4 = tpu.matmul %0, %3, %cst {dimension_numbers = #tpu.dot_dimension_numbers<[1], [0], [0], [1], [0, 0, 1, 1], [], []>} : vector<4x32xf32>, vector<32x16xf32>, vector<4x16xf32> -> vector<4x16xf32>
    %5 = vector.shape_cast %1 : vector<4x8x32xf32> to vector<32x32xf32>
    %c0_8 = arith.constant 0 : index
    %c0_9 = arith.constant 0 : index
    %6 = vector.load %arg4[%c0_8, %c0_9] : memref<32x16xf32, #tpu.memory_space<vmem>>, vector<32x16xf32>
    %cst_10 = arith.constant dense<0.000000e+00> : vector<32x16xf32>
    %7 = tpu.matmul %5, %6, %cst_10 {dimension_numbers = #tpu.dot_dimension_numbers<[1], [0], [0], [1], [0, 0, 1, 1], [], []>} : vector<32x32xf32>, vector<32x16xf32>, vector<32x16xf32> -> vector<32x16xf32>
    %8 = vector.shape_cast %7 : vector<32x16xf32> to vector<4x8x16xf32>
    %9 = vector.shape_cast %4 : vector<4x16xf32> to vector<4x1x16xf32>
    %10 = vector.broadcast %9 : vector<4x1x16xf32> to vector<4x8x16xf32>
    %11 = arith.addf %8, %10 : vector<4x8x16xf32>
    %c0_11 = arith.constant 0 : index
    %c0_12 = arith.constant 0 : index
    %12 = vector.load %arg5[%c0_11, %c0_12] : memref<1x16xf32, #tpu.memory_space<vmem>>, vector<1x16xf32>
    %13 = vector.shape_cast %12 : vector<1x16xf32> to vector<1x1x16xf32>
    %14 = vector.broadcast %13 : vector<1x1x16xf32> to vector<4x8x16xf32>
    %15 = arith.addf %11, %14 : vector<4x8x16xf32>
    %16 = math.tanh %15 : vector<4x8x16xf32>
    %c0_13 = arith.constant 0 : index
    %c0_14 = arith.constant 0 : index
    %17 = vector.load %arg6[%c0_13, %c0_14] : memref<1x16xf32, #tpu.memory_space<vmem>>, vector<1x16xf32>
    %18 = vector.shape_cast %17 : vector<1x16xf32> to vector<1x1x16xf32>
    %19 = vector.broadcast %18 : vector<1x1x16xf32> to vector<4x8x16xf32>
    %20 = arith.mulf %16, %19 : vector<4x8x16xf32>
    %cst_15 = arith.constant dense<0.000000e+00> : vector<4x8xf32>
    %21 = vector.multi_reduction <add>, %20, %cst_15 [2] : vector<4x8x16xf32> to vector<4x8xf32>
    %cst_16 = arith.constant dense<0xFF800000> : vector<4xf32>
    %22 = vector.multi_reduction <maximumf>, %21, %cst_16 [1] : vector<4x8xf32> to vector<4xf32>
    %23 = vector.shape_cast %22 : vector<4xf32> to vector<4x1xf32>
    %24 = vector.broadcast %23 : vector<4x1xf32> to vector<4x8xf32>
    %25 = arith.subf %21, %24 : vector<4x8xf32>
    %26 = math.exp %25 : vector<4x8xf32>
    %cst_17 = arith.constant dense<0.000000e+00> : vector<4xf32>
    %27 = vector.multi_reduction <add>, %26, %cst_17 [1] : vector<4x8xf32> to vector<4xf32>
    %28 = vector.shape_cast %27 : vector<4xf32> to vector<4x1xf32>
    %29 = vector.broadcast %28 : vector<4x1xf32> to vector<4x8xf32>
    %30 = arith.divf %26, %29 : vector<4x8xf32>
    %31 = vector.shape_cast %30 : vector<4x8xf32> to vector<4x8x1xf32>
    %32 = vector.broadcast %31 : vector<4x8x1xf32> to vector<4x8x32xf32>
    %33 = arith.mulf %32, %1 : vector<4x8x32xf32>
    %cst_18 = arith.constant dense<0.000000e+00> : vector<4x32xf32>
    %34 = vector.multi_reduction <add>, %33, %cst_18 [1] : vector<4x8x32xf32> to vector<4x32xf32>
    %c0_19 = arith.constant 0 : index
    %c0_20 = arith.constant 0 : index
    %35 = vector.load %arg7[%c0_19, %c0_20] : memref<32x96xf32, #tpu.memory_space<vmem>>, vector<32x96xf32>
    %cst_21 = arith.constant dense<0.000000e+00> : vector<4x96xf32>
    %36 = tpu.matmul %0, %35, %cst_21 {dimension_numbers = #tpu.dot_dimension_numbers<[1], [0], [0], [1], [0, 0, 1, 1], [], []>} : vector<4x32xf32>, vector<32x96xf32>, vector<4x96xf32> -> vector<4x96xf32>
    %c0_22 = arith.constant 0 : index
    %c0_23 = arith.constant 0 : index
    %37 = vector.load %arg8[%c0_22, %c0_23] : memref<32x96xf32, #tpu.memory_space<vmem>>, vector<32x96xf32>
    %cst_24 = arith.constant dense<0.000000e+00> : vector<4x96xf32>
    %38 = tpu.matmul %34, %37, %cst_24 {dimension_numbers = #tpu.dot_dimension_numbers<[1], [0], [0], [1], [0, 0, 1, 1], [], []>} : vector<4x32xf32>, vector<32x96xf32>, vector<4x96xf32> -> vector<4x96xf32>
    %39 = arith.addf %36, %38 : vector<4x96xf32>
    %c0_25 = arith.constant 0 : index
    %c0_26 = arith.constant 0 : index
    %40 = vector.load %arg9[%c0_25, %c0_26] : memref<1x96xf32, #tpu.memory_space<vmem>>, vector<1x96xf32>
    %41 = vector.broadcast %40 : vector<1x96xf32> to vector<4x96xf32>
    %42 = arith.addf %39, %41 : vector<4x96xf32>
    %c0_27 = arith.constant 0 : index
    %c0_28 = arith.constant 0 : index
    %43 = vector.load %arg10[%c0_27, %c0_28] : memref<32x96xf32, #tpu.memory_space<vmem>>, vector<32x96xf32>
    %cst_29 = arith.constant dense<0.000000e+00> : vector<4x96xf32>
    %44 = tpu.matmul %2, %43, %cst_29 {dimension_numbers = #tpu.dot_dimension_numbers<[1], [0], [0], [1], [0, 0, 1, 1], [], []>} : vector<4x32xf32>, vector<32x96xf32>, vector<4x96xf32> -> vector<4x96xf32>
    %c0_30 = arith.constant 0 : index
    %c0_31 = arith.constant 0 : index
    %45 = vector.load %arg11[%c0_30, %c0_31] : memref<1x96xf32, #tpu.memory_space<vmem>>, vector<1x96xf32>
    %46 = vector.broadcast %45 : vector<1x96xf32> to vector<4x96xf32>
    %47 = arith.addf %44, %46 : vector<4x96xf32>
    %48 = vector.extract_strided_slice %42 {offsets = [0, 0], sizes = [4, 32], strides = [1, 1]} : vector<4x96xf32> to vector<4x32xf32>
    %49 = vector.extract_strided_slice %47 {offsets = [0, 0], sizes = [4, 32], strides = [1, 1]} : vector<4x96xf32> to vector<4x32xf32>
    %50 = arith.addf %48, %49 : vector<4x32xf32>
    %51 = arith.negf %50 : vector<4x32xf32>
    %52 = math.exp %51 : vector<4x32xf32>
    %cst_32 = arith.constant 1.000000e+00 : f32
    %53 = vector.broadcast %cst_32 : f32 to vector<4x32xf32>
    %54 = arith.addf %53, %52 : vector<4x32xf32>
    %55 = arith.divf %53, %54 : vector<4x32xf32>
    %56 = vector.extract_strided_slice %42 {offsets = [0, 32], sizes = [4, 32], strides = [1, 1]} : vector<4x96xf32> to vector<4x32xf32>
    %57 = vector.extract_strided_slice %47 {offsets = [0, 32], sizes = [4, 32], strides = [1, 1]} : vector<4x96xf32> to vector<4x32xf32>
    %58 = arith.addf %56, %57 : vector<4x32xf32>
    %59 = arith.negf %58 : vector<4x32xf32>
    %60 = math.exp %59 : vector<4x32xf32>
    %cst_33 = arith.constant 1.000000e+00 : f32
    %61 = vector.broadcast %cst_33 : f32 to vector<4x32xf32>
    %62 = arith.addf %61, %60 : vector<4x32xf32>
    %63 = arith.divf %61, %62 : vector<4x32xf32>
    %64 = vector.extract_strided_slice %42 {offsets = [0, 64], sizes = [4, 32], strides = [1, 1]} : vector<4x96xf32> to vector<4x32xf32>
    %65 = vector.extract_strided_slice %47 {offsets = [0, 64], sizes = [4, 32], strides = [1, 1]} : vector<4x96xf32> to vector<4x32xf32>
    %66 = arith.mulf %55, %65 : vector<4x32xf32>
    %67 = arith.addf %64, %66 : vector<4x32xf32>
    %68 = math.tanh %67 : vector<4x32xf32>
    %cst_34 = arith.constant 1.000000e+00 : f32
    %69 = vector.broadcast %cst_34 : f32 to vector<4x32xf32>
    %70 = arith.subf %69, %63 : vector<4x32xf32>
    %71 = arith.mulf %70, %68 : vector<4x32xf32>
    %72 = arith.mulf %63, %2 : vector<4x32xf32>
    %73 = arith.addf %71, %72 : vector<4x32xf32>
    %c0_35 = arith.constant 0 : index
    %c0_36 = arith.constant 0 : index
    %74 = vector.load %arg12[%c0_35, %c0_36] : memref<32x64xf32, #tpu.memory_space<vmem>>, vector<32x64xf32>
    %cst_37 = arith.constant dense<0.000000e+00> : vector<4x64xf32>
    %75 = tpu.matmul %73, %74, %cst_37 {dimension_numbers = #tpu.dot_dimension_numbers<[1], [0], [0], [1], [0, 0, 1, 1], [], []>} : vector<4x32xf32>, vector<32x64xf32>, vector<4x64xf32> -> vector<4x64xf32>
    %c0_38 = arith.constant 0 : index
    %c0_39 = arith.constant 0 : index
    %76 = vector.load %arg13[%c0_38, %c0_39] : memref<1x64xf32, #tpu.memory_space<vmem>>, vector<1x64xf32>
    %77 = vector.broadcast %76 : vector<1x64xf32> to vector<4x64xf32>
    %78 = arith.addf %75, %77 : vector<4x64xf32>
    %79 = tpu.concatenate %78, %73 in 1 : vector<4x64xf32>, vector<4x32xf32> -> vector<4x96xf32>
    %c0_40 = arith.constant 0 : index
    %c0_41 = arith.constant 0 : index
    %80 = vector.load %arg14[%c0_40, %c0_41] : memref<4x96xf32, #tpu.memory_space<vmem>>, vector<4x96xf32>
    tpu.vector_store %arg14[%c0_40, %c0_41], %79 {strides = array<i32>} : memref<4x96xf32, #tpu.memory_space<vmem>>, vector<4x96xf32>,
    return
  }
}

</mosaic_0001>

<bundles_post_ra>
// kernel: ans_att_seq_forward.1
= control target key start
LH: loop header
LB: loop body
LE: loop exit
PB: predicated region body
PF: predicated region fallthrough
CT: control target
= control target key end

     0   :  { %v1037_v0 = vmov 0.0   ;;  %vm1038_vm0 = vmmov 0   ;;  %vm57_vm1 = vcmask 261120   ;;  %v1039_v14 = vmov 1966171168   ;;  %s1042_s30 = smov 96   ;;  %s1317_s3 = inlined_call_operand.vmem [shape: f32[32,16], index: 3, kind: input, shape index: {}]   ;;  %s1318_s4 = inlined_call_operand.vmem [shape: f32[32,16], index: 4, kind: input, shape index: {}]   ;;  %s1319_s0 = inlined_call_operand.vmem [shape: f32[4,32], index: 0, kind: input, shape index: {}]   ;;  %s1320_s1 = inlined_call_operand.vmem [shape: f32[4,8,32], index: 1, kind: input, shape index: {}]   ;;  %s1321_s5 = inlined_call_operand.vmem [shape: f32[1,16], index: 5, kind: input, shape index: {}]   ;;  %s1322_s6 = inlined_call_operand.vmem [shape: f32[1,16], index: 6, kind: input, shape index: {}]   ;;  %s1323_s8 = inlined_call_operand.vmem [shape: f32[32,96], index: 8, kind: input, shape index: {}]   ;;  %s1324_s7 = inlined_call_operand.vmem [shape: f32[32,96], index: 7, kind: input, shape index: {}]   ;;  %s1325_s10 = inlined_call_operand.vmem [shape: f32[32,96], index: 10, kind: input, shape index: {}]   ;;  %s1326_s2 = inlined_call_operand.vmem [shape: f32[4,32], index: 2, kind: input, shape index: {}]   ;;  %s1327_s11 = inlined_call_operand.vmem [shape: f32[1,96], index: 11, kind: input, shape index: {}]   ;;  %s1328_s9 = inlined_call_operand.vmem [shape: f32[1,96], index: 9, kind: input, shape index: {}]   ;;  %s1329_s12 = inlined_call_operand.vmem [shape: f32[32,64], index: 12, kind: input, shape index: {}]   ;;  %s1330_s13 = inlined_call_operand.vmem [shape: f32[1,64], index: 13, kind: input, shape index: {}]   ;;  %s1331_s14 = inlined_call_operand.vmem [shape: f32[4,96], index: 14, kind: output, shape index: {}]  }
   0x1   :  { %929 = vmatprep.subr.mxu0 %v1037_v0  ;;  %v56_v1 = vld [vmem:[%s1317_s3 + $0x18] sm:$0xff]  ;;  %v55_v3 = vld [vmem:[%s1317_s3 + $0x10] sm:$0xff]  ;;  %937 = vmatprep.mubr.msk.f32.mxu0 %vm1038_vm0, %v1037_v0  ;;  %v54_v5 = vld [vmem:[%s1317_s3 + $0x8] sm:$0xff]  ;;  %v234_v15 = vunpack.c.l.s4 %v1039_v14  ;;  %v236_v16 = vlaneseq  ;;  %vm307_vm2 = vcmask 130048   ;;  %vm342_vm3 = vcmask 1041409  }
   0x2   :  { %v134_v2 = vld [vmem:[%s1318_s4 + $0x18] sm:$0xff]  ;;  %930 = vmatpush3.msra.mxu0 %v56_v1  ;;  %v133_v4 = vld [vmem:[%s1318_s4 + $0x10] sm:$0xff]  ;;  %v132_v6 = vld [vmem:[%s1318_s4 + $0x8] sm:$0xff]  ;;  %vm344_vm4 = vcmask 1042434   ;;  %vm346_vm5 = vcmask 1043459   ;;  %vm349_vm6 = vcmask 60416  }
   0x3   :  { %940 = vmatprep.subr.mxu1 %v134_v2  ;;  %931 = vmatprep.subr.mxu0 %v1037_v0  ;;  %v53_v7 = vld [vmem:[%s1317_s3] sm:$0xff]  ;;  %v1162_v11 = vld [vmem:[%s1320_s1 + $0x8] sm:$0xff]  ;;  %v1169_v12 = vld [vmem:[%s1320_s1 + $0x10] sm:$0xff]  ;;  %v235_v17 = vunpack.c.0.s8 %v234_v15  ;;  %v1190_v18 = vshrl.u32 %v236_v16, 7  ;;  %v325_v59 = vand.u32 127, %v236_v16  ;;  %v1040_v15 = vmov 0  }
   0x4   :  { %941 = vmatpush3.msra.mxu1 %v134_v2  ;;  %932 = vmatpush3.msra.mxu0 %v55_v3  ;;  %v131_v8 = vld [vmem:[%s1318_s4] sm:$0xff]  ;;  %v1182_v13 = vld [vmem:[%s1320_s1 + $0x18] sm:$0xff]  ;;  %s1043_s3 = smov 32   ;;  %vm873_vm7 = vcmask 523264   ;;  %vm875_vm8 = vcmask 781312  }
   0x5   :  { %942 = vmatprep.subr.mxu1 %v133_v4  ;;  %933 = vmatprep.subr.mxu0 %v1037_v0  ;;  %v1151_v9 = vld [vmem:[%s1319_s0] sm:$0xf]  ;;  %v238_v19 = vsub.s32 %v235_v17, %v1190_v18  ;;  %v1194_v22 = vsub.s32 0, %v1190_v18  ;;  %v328_v61 = vsub.s32 %v325_v59, %v1190_v18  ;;  %v360_v16 = vsub.s32 1, %v1190_v18 }
   0x6   :  { %943 = vmatpush3.msra.mxu1 %v133_v4  ;;  %934 = vmatpush3.msra.mxu0 %v54_v5  ;;  %v1157_v10 = vld [vmem:[%s1320_s1] sm:$0xff]  ;;  %v364_v17 = vsub.s32 2, %v1190_v18 }
   0x7   :  { %944 = vmatprep.subr.mxu1 %v132_v6  ;;  %935 = vmatprep.subr.mxu0 %v1037_v0  ;;  %v886_v31 = vld [vmem:[%s1321_s5] ss:$0 sm:$0xff] }
   0x8   :  { %945 = vmatpush3.msra.mxu1 %v132_v6  ;;  %936 = vmatpush3.msra.mxu0 %v53_v7  ;;  %v887_v46 = vld [vmem:[%s1322_s6] ss:$0 sm:$0xff] }
   0x9   :  { %946 = vmatprep.subr.mxu1 %v131_v8  ;;  %938 = vmatmul.mubr.msk.f32.vlgmr.msra.gmra.mxu0 %vm57_vm1, %v1151_v9 }
   0xa   :  { %947 = vmatpush3.msra.mxu1 %v131_v8  ;;  %948 = vmatprep.mubr.msk.f32.mxu1 %vm57_vm1, %v1157_v10 }
   0xb   :  { %954 = vmatprep.subr.mxu0 %v1037_v0  ;;  %949 = vmatmul.mubr.msk.f32.vlgmr.msra.gmra.mxu1 %vm57_vm1, %v1162_v11 }
   0xc   :  { %965 = vmatprep.subr.mxu1 %v1037_v0  ;;  %951 = vmatprep.mubr.msk.f32.mxu1 %vm57_vm1, %v1169_v12 }
   0xd   :  { %962 = vmatprep.mubr.msk.f32.mxu0 %vm1038_vm0, %v1037_v0  ;;  %1006 = vset.pattern.permute.xlu0 %v1040_v15 }
   0xe   :  { %1005 = vset.pattern.permute.xlu1 %v1040_v15 }
   0xf   :  { %952 = vmatmul.mubr.msk.f32.gmra.mxu1 %vm57_vm1, %v1182_v13 }
  0x10   :  { %973 = vmatprep.mubr.msk.f32.mxu1 %vm1038_vm0, %v1037_v0 }
  0xc9   :  { %v127_v20 = vpop.f32.mrf.mxu0 }
  0xca   :  { %v239_v21 = vrot.slane %v127_v20, %v238_v19 }
  0xcb   :  { %v950_v23 = vpop.f32.mrf.mxu1  ;;  %v939_v24 = vpop.f32.mrf.mxu0 }
  0xcc   :  { %v240_v25 = vcombine.high %v239_v21, %v239_v21  ;;  %v247_v26 = vrot.slane %v239_v21, %v238_v19 }
  0xcd   :  { %v213_v27 = vpop.f32.mrf.mxu1 }
  0xce   :  { %v254_v28 = vrot.slane %v240_v25, %v238_v19  ;;  %v260_v29 = vrot.slane %v247_v26, %v1194_v22  ;;  %v255_v30 = vcombine.high %v247_v26, %v247_v26  ;;  %v368_v19 = vsub.s32 3, %v1190_v18 }
  0xcf   :  { %v953_v32 = vpop.f32.mrf.mxu1 }
  0xd0   :  { %v264_v33 = vrot.slane %v254_v28, %v1194_v22  ;;  %v277_v34 = vadd.f32 %v260_v29, %v213_v27  ;;  %v256_v35 = vcombine.high %v254_v28, %v254_v28  ;;  %v268_v36 = vrot.slane %v255_v30, %v1194_v22 }
  0xd1   :  { %v223_v37 = vpop.f32.mrf.mxu1 }
  0xd2   :  { %v278_v38 = vadd.f32 %v950_v23, %v264_v33  ;;  %v288_v39 = vadd.f32 %v886_v31, %v277_v34  ;;  %v272_v40 = vrot.slane %v256_v35, %v1194_v22  ;;  %v279_v41 = vadd.f32 %v268_v36, %v223_v37 }
  0xd4   :  { %v289_v42 = vadd.f32 %v886_v31, %v278_v38  ;;  %1007 = vtanh.f32 %v288_v39  ;;  %v280_v43 = vadd.f32 %v953_v32, %v272_v40  ;;  %v290_v44 = vadd.f32 %v886_v31, %v279_v41 }
  0xd6   :  { %1009 = vtanh.f32 %v289_v42  ;;  %v291_v45 = vadd.f32 %v886_v31, %v280_v43 }
  0xd7   :  { %1011 = vtanh.f32 %v290_v44 }
  0xd8   :  { %1013 = vtanh.f32 %v291_v45 }
  0xe1   :  { %v1008_v47 = vpop.eup %1007 }
  0xe2   :  { %v303_v48 = vmul.f32 %v1008_v47, %v887_v46 }
  0xe3   :  { %v1010_v49 = vpop.eup %1009 }
  0xe4   :  { %v1012_v50 = vpop.eup %1011  ;;  %v308_v51 = vsel %vm307_vm2, %v303_v48, 0.0  ;;  %v304_v52 = vmul.f32 %v1010_v49, %v887_v46 }
  0xe5   :  { %v1014_v53 = vpop.eup %1013  ;;  %309 = vadd.xlane.f32.xlu0 %v308_v51  ;;  %v305_v54 = vmul.f32 %v1012_v50, %v887_v46 }
  0xe6   :  { %v306_v56 = vmul.f32 %v1014_v53, %v887_v46  ;;  %v311_v57 = vsel %vm307_vm2, %v304_v52, 0.0 }
  0xe7   :  { %v314_v55 = vsel %vm307_vm2, %v305_v54, 0.0 }
  0xe8   :  { %315 = vadd.xlane.f32.xlu1 %v314_v55  ;;  %v317_v58 = vsel %vm307_vm2, %v306_v56, 0.0 }
  0xe9   :  { %312 = vadd.xlane.f32.xlu0 %v311_v57 }
  0xec   :  { %318 = vadd.xlane.f32.xlu1 %v317_v58 }
 0x16e   :  { %v310_v60 = vpop.xlane.xlu0 %309 }
 0x16f   :  { %v329_v1 = vrot.slane %v310_v60, %v328_v61 }
 0x171   :  { %v316_v62 = vpop.xlane.xlu1 %315 }
 0x172   :  { %v313_v63 = vpop.xlane.xlu0 %312  ;;  %v337_v3 = vrot.slane %v316_v62, %v328_v61 }
 0x173   :  { %v333_v2 = vrot.slane %v313_v63, %v328_v61 }
 0x175   :  { %v319_v4 = vpop.xlane.xlu1 %318  ;;  %v343_v5 = vsel %vm342_vm3, %v333_v2, %v329_v1  ;;  %v508_v1 = vld [vmem:[%s1324_s7 + $0x10] sm:$0xff]  ;;  %v511_v2 = vld [vmem:[%s1323_s8 + $0x8] sm:$0xff] }
 0x176   :  { %v341_v6 = vrot.slane %v319_v4, %v328_v61  ;;  %v345_v7 = vsel %vm344_vm4, %v337_v3, %v343_v5  ;;  %v507_v3 = vld [vmem:[%s1324_s7 + $0x8] sm:$0xff]  ;;  %v506_v5 = vld [vmem:[%s1324_s7] sm:$0xff] }
 0x178   :  { %v347_v8 = vsel %vm346_vm5, %v341_v6, %v345_v7 }
 0x179   :  { %v350_v14 = vsel %vm349_vm6, %v347_v8, -inf }
 0x17a   :  { %351 = vmax.xlane.f32.xlu0 %v350_v14 }
 0x203   :  { %v352_v20 = vpop.xlane.xlu0 %351 }
 0x204   :  { %v357_v21 = vrot.slane %v352_v20, %v1194_v22  ;;  %v361_v23 = vrot.slane %v352_v20, %v360_v16  ;;  %v365_v24 = vrot.slane %v352_v20, %v364_v17  ;;  %v369_v25 = vrot.slane %v352_v20, %v368_v19 }
 0x206   :  { %v374_v26 = vsub.f32 %v310_v60, %v357_v21  ;;  %v375_v27 = vsub.f32 %v313_v63, %v361_v23  ;;  %v376_v28 = vsub.f32 %v316_v62, %v365_v24  ;;  %v377_v31 = vsub.f32 %v319_v4, %v369_v25  ;;  %v509_v62 = vld [vmem:[%s1324_s7 + $0x18] sm:$0xff]  ;;  %v512_v63 = vld [vmem:[%s1323_s8 + $0x10] sm:$0xff]  ;;  %v510_v4 = vld [vmem:[%s1323_s8] sm:$0xff] }
 0x207   :  { %966 = vmatpush3.msra.mxu1 %v509_v62 }
 0x208   :  { %v378_v29 = vmul.f32 1.442695, %v374_v26  ;;  %v380_v30 = vmul.f32 1.442695, %v375_v27  ;;  %v382_v32 = vmul.f32 1.442695, %v376_v28  ;;  %967 = vmatprep.subr.mxu1 %v1037_v0 }
 0x209   :  { %v384_v33 = vmul.f32 1.442695, %v377_v31  ;;  %968 = vmatpush3.msra.mxu1 %v508_v1 }
 0x20a   :  { %1015 = vpow2.f32 %v378_v29  ;;  %969 = vmatprep.subr.mxu1 %v1037_v0 }
 0x20b   :  { %1017 = vpow2.f32 %v380_v30  ;;  %970 = vmatpush3.msra.mxu1 %v507_v3 }
 0x20c   :  { %1019 = vpow2.f32 %v382_v32  ;;  %971 = vmatprep.subr.mxu1 %v1037_v0 }
 0x20d   :  { %1021 = vpow2.f32 %v384_v33  ;;  %972 = vmatpush3.msra.mxu1 %v506_v5 }
 0x20e   :  { %974 = vmatmul.mubr.msk.f32.vlgmr.msra.gmra.mxu1 %vm57_vm1, %v1151_v9  ;;  %987 = vmatprep.subr.mxu1 %v1037_v0 }
 0x20f   :  { %995 = vmatprep.mubr.msk.f32.mxu1 %vm1038_vm0, %v1037_v0 }
 0x217   :  { %v1016_v34 = vpop.eup %1015 }
 0x218   :  { %v1018_v18 = vpop.eup %1017  ;;  %391 = vperm.xlu1 %1005, %v1016_v34  }
 0x219   :  { %394 = vperm.xlu0 %1006, %v1018_v18   ;;  %v1020_v35 = vpop.eup %1019 }
 0x21a   :  { %v1022_v36 = vpop.eup %1021 }
 0x21c   :  { %397 = vperm.xlu1 %1005, %v1020_v35  }
 0x220   :  { %400 = vperm.xlu1 %1005, %v1022_v36  }
 0x293   :  { %v392_v37 = vpop.permute.xlu1 %391 }
 0x294   :  { %v395_v38 = vpop.permute.xlu0 %394  ;;  %v405_v41 = vrot.slane %v392_v37, %v328_v61 }
 0x295   :  { %v409_v40 = vrot.slane %v395_v38, %v328_v61 }
 0x297   :  { %v398_v39 = vpop.permute.xlu1 %397  ;;  %v418_v44 = vsel %vm342_vm3, %v409_v40, %v405_v41 }
 0x298   :  { %v413_v42 = vrot.slane %v398_v39, %v328_v61 }
 0x29a   :  { %v419_v46 = vsel %vm344_vm4, %v413_v42, %v418_v44 }
 0x29b   :  { %v401_v43 = vpop.permute.xlu1 %400 }
 0x29c   :  { %v417_v45 = vrot.slane %v401_v43, %v328_v61 }
 0x29e   :  { %v420_v47 = vsel %vm346_vm5, %v417_v45, %v419_v46  ;;  %v674_v45 = vld [vmem:[%s1325_s10 + $0x18] sm:$0xff] }
 0x29f   :  { %v422_v48 = vsel %vm349_vm6, %v420_v47, 0.0  ;;  %v673_v47 = vld [vmem:[%s1325_s10 + $0x10] sm:$0xff] }
 0x2a0   :  { %423 = vadd.xlane.f32.xlu1 %v422_v48  ;;  %v672_v48 = vld [vmem:[%s1325_s10 + $0x8] sm:$0xff] }
 0x329   :  { %v424_v49 = vpop.xlane.xlu1 %423 }
 0x32a   :  { %v429_v50 = vrot.slane %v424_v49, %v1194_v22  ;;  %v433_v51 = vrot.slane %v424_v49, %v360_v16  ;;  %v437_v52 = vrot.slane %v424_v49, %v364_v17  ;;  %v441_v53 = vrot.slane %v424_v49, %v368_v19  ;;  %v513_v22 = vld [vmem:[%s1323_s8 + $0x18] sm:$0xff]  ;;  %v671_v49 = vld [vmem:[%s1325_s10] sm:$0xff]  ;;  %s1041_s10 = smov 64  }
 0x32b   :  { %955 = vmatpush3.msra.mxu0 %v513_v22 }
 0x32c   :  { %1023 = vrcp.f32 %v429_v50  ;;  %956 = vmatprep.subr.mxu0 %v1037_v0  ;;  %v52_v50 = vld [vmem:[%s1326_s2] sm:$0xf] }
 0x32d   :  { %1025 = vrcp.f32 %v433_v51  ;;  %957 = vmatpush3.msra.mxu0 %v512_v63  ;;  %v659_v51 = vpop.f32.mrf.mxu1 }
 0x32e   :  { %1027 = vrcp.f32 %v437_v52  ;;  %958 = vmatprep.subr.mxu0 %v1037_v0 }
 0x32f   :  { %1029 = vrcp.f32 %v441_v53  ;;  %959 = vmatpush3.msra.mxu0 %v511_v2  ;;  %v975_v52 = vpop.f32.mrf.mxu1 }
 0x330   :  { %960 = vmatprep.subr.mxu0 %v1037_v0 }
 0x331   :  { %961 = vmatpush3.msra.mxu0 %v510_v4 }
 0x332   :  { %976 = vmatprep.subr.mxu0 %v1037_v0 }
 0x339   :  { %v1024_v54 = vpop.eup %1023 }
 0x33a   :  { %v447_v55 = vmul.f32 %v1024_v54, %v1016_v34  ;;  %v1026_v56 = vpop.eup %1025 }
 0x33b   :  { %v449_v57 = vmul.f32 %v1026_v56, %v1018_v18  ;;  %v1028_v58 = vpop.eup %1027 }
 0x33c   :  { %456 = vperm.xlu0 %1006, %v447_v55   ;;  %v451_v59 = vmul.f32 %v1028_v58, %v1020_v35  ;;  %v1030_v60 = vpop.eup %1029  ;;  %v891_v55 = vld [vmem:[%s1327_s11] ss:$0 sm:$0xff] }
 0x33d   :  { %v453_v61 = vmul.f32 %v1030_v60, %v1022_v36  ;;  %v890_v60 = vld [vmem:[%s1328_s9] ss:$0 sm:$0xff] }
 0x340   :  { %461 = vperm.xlu0 %1006, %v449_v57  }
 0x344   :  { %466 = vperm.xlu0 %1006, %v451_v59  }
 0x348   :  { %471 = vperm.xlu0 %1006, %v453_v61  }
 0x3b7   :  { %v457_v6 = vpop.permute.xlu0 %456 }
 0x3b8   :  { %v474_v7 = vmul.f32 %v457_v6, %v1157_v10 }
 0x3ba   :  { %v478_v8 = vsel %vm57_vm1, %v474_v7, 0.0  ;;  %v787_v7 = vld [vmem:[%s1329_s12 + $0x18] sm:$0xff] }
 0x3bb   :  { %v479_v14 = vrot.slane %v478_v8, 4  ;;  %v462_v15 = vpop.permute.xlu0 %461  ;;  %988 = vmatpush3.msra.mxu1 %v787_v7 }
 0x3bc   :  { %v475_v16 = vmul.f32 %v462_v15, %v1162_v11  ;;  %989 = vmatprep.subr.mxu1 %v1037_v0 }
 0x3bd   :  { %v480_v19 = vadd.f32 %v479_v14, %v478_v8  ;;  %v786_v8 = vld [vmem:[%s1329_s12 + $0x10] sm:$0xff]  ;;  %v785_v14 = vld [vmem:[%s1329_s12 + $0x8] sm:$0xff] }
 0x3be   :  { %v485_v17 = vsel %vm57_vm1, %v475_v16, 0.0  ;;  %990 = vmatpush3.msra.mxu1 %v786_v8  ;;  %v784_v16 = vld [vmem:[%s1329_s12] sm:$0xff] }
 0x3bf   :  { %v486_v20 = vrot.slane %v485_v17, 4  ;;  %v467_v21 = vpop.permute.xlu0 %466  ;;  %v481_v25 = vrot.slane %v480_v19, 2  ;;  %991 = vmatprep.subr.mxu1 %v1037_v0 }
 0x3c0   :  { %v476_v9 = vmul.f32 %v467_v21, %v1169_v12  ;;  %992 = vmatpush3.msra.mxu1 %v785_v14 }
 0x3c1   :  { %v487_v23 = vadd.f32 %v486_v20, %v485_v17  ;;  %v482_v31 = vadd.f32 %v481_v25, %v480_v19  ;;  %993 = vmatprep.subr.mxu1 %v1037_v0  ;;  %v894_v25 = vld [vmem:[%s1330_s13] ss:$0 sm:$0xff] }
 0x3c2   :  { %v492_v24 = vsel %vm57_vm1, %v476_v9, 0.0  ;;  %994 = vmatpush3.msra.mxu1 %v784_v16 }
 0x3c3   :  { %v488_v26 = vrot.slane %v487_v23, 2  ;;  %v493_v27 = vrot.slane %v492_v24, 4  ;;  %v472_v10 = vpop.permute.xlu0 %471  ;;  %v483_v12 = vrot.slane %v482_v31, 1 }
 0x3c4   :  { %v477_v28 = vmul.f32 %v472_v10, %v1182_v13 }
 0x3c5   :  { %v489_v29 = vadd.f32 %v488_v26, %v487_v23  ;;  %v494_v30 = vadd.f32 %v493_v27, %v492_v24  ;;  %v484_v41 = vadd.f32 %v483_v12, %v482_v31 }
 0x3c6   :  { %v499_v11 = vsel %vm57_vm1, %v477_v28, 0.0 }
 0x3c7   :  { %v495_v32 = vrot.slane %v494_v30, 2  ;;  %v500_v33 = vrot.slane %v499_v11, 4  ;;  %v490_v34 = vrot.slane %v489_v29, 1 }
 0x3c9   :  { %v496_v18 = vadd.f32 %v495_v32, %v494_v30  ;;  %v501_v35 = vadd.f32 %v500_v33, %v499_v11  ;;  %v491_v38 = vadd.f32 %v490_v34, %v489_v29 }
 0x3cb   :  { %v497_v36 = vrot.slane %v496_v18, 1  ;;  %v502_v37 = vrot.slane %v501_v35, 2  ;;  %v518_v13 = vsel %vm342_vm3, %v491_v38, %v484_v41 }
 0x3cd   :  { %v503_v39 = vadd.f32 %v502_v37, %v501_v35  ;;  %v498_v40 = vadd.f32 %v497_v36, %v496_v18 }
 0x3cf   :  { %v504_v42 = vrot.slane %v503_v39, 1  ;;  %v519_v44 = vsel %vm344_vm4, %v498_v40, %v518_v13 }
 0x3d1   :  { %v505_v43 = vadd.f32 %v504_v42, %v503_v39 }
 0x3d3   :  { %v520_v46 = vsel %vm346_vm5, %v505_v43, %v519_v44 }
 0x3d4   :  { %963 = vmatmul.mubr.msk.f32.vlgmr.msra.gmra.mxu0 %vm57_vm1, %v520_v46 }
 0x3d5   :  { %977 = vmatpush3.msra.mxu0 %v674_v45  ;;  %984 = vmatprep.mubr.msk.f32.mxu0 %vm1038_vm0, %v1037_v0 }
 0x3d6   :  { %978 = vmatprep.subr.mxu0 %v1037_v0 }
 0x3d7   :  { %979 = vmatpush3.msra.mxu0 %v673_v47 }
 0x3d8   :  { %980 = vmatprep.subr.mxu0 %v1037_v0 }
 0x3d9   :  { %981 = vmatpush3.msra.mxu0 %v672_v48 }
 0x3da   :  { %982 = vmatprep.subr.mxu0 %v1037_v0 }
 0x3db   :  { %983 = vmatpush3.msra.mxu0 %v671_v49 }
 0x3dc   :  { %985 = vmatmul.mubr.msk.f32.vlgmr.msra.gmra.mxu0 %vm57_vm1, %v52_v50 }
 0x494   :  { %v589_v53 = vpop.f32.mrf.mxu0 }
 0x495   :  { %v660_v59 = vadd.f32 %v659_v51, %v589_v53 }
 0x496   :  { %v964_v54 = vpop.f32.mrf.mxu0 }
 0x497   :  { %v670_v61 = vadd.f32 %v890_v60, %v660_v59 }
 0x49c   :  { %v751_v56 = vpop.f32.mrf.mxu0 }
 0x49d   :  { %v752_v57 = vadd.f32 %v891_v55, %v751_v56 }
 0x49e   :  { %v986_v58 = vpop.f32.mrf.mxu0 }
 0x49f   :  { %763 = vrot.lane.b32.xlu1 %v752_v57, %s1041_s10  ;;  %v755_v22 = vadd.f32 %v752_v57, %v670_v61 }
 0x4a1   :  { %v893_v62 = vmul.f32 -1.442695, %v755_v22 }
 0x4a3   :  { %1031 = vpow2.f32 %v893_v62 }
 0x4b0   :  { %v1032_v63 = vpop.eup %1031 }
 0x4b1   :  { %v759_v1 = vadd.f32 1.0, %v1032_v63 }
 0x4b3   :  { %1033 = vrcp.f32 %v759_v1 }
 0x4c0   :  { %v1034_v2 = vpop.eup %1033 }
 0x4c1   :  { %v773_v19 = vsub.f32 1.0, %v1034_v2 }
 0x511   :  { %v764_v3 = vpop.permute.xlu1 %763 }
 0x512   :  { %v766_v4 = vmul.f32 %v1034_v2, %v764_v3 }
 0x514   :  { %768 = vrot.lane.b32.xlu0 %v766_v4, %s1041_s10 }
 0x586   :  { %v769_v5 = vpop.permute.xlu0 %768 }
 0x587   :  { %v771_v6 = vadd.f32 %v769_v5, %v670_v61 }
 0x589   :  { %1035 = vtanh.f32 %v771_v6 }
 0x596   :  { %v1036_v15 = vpop.eup %1035 }
 0x597   :  { %775 = vrot.lane.b32.xlu0 %v1036_v15, %s1042_s30 }
 0x59b   :  { %779 = vrot.lane.b32.xlu0 %v52_v50, %s1043_s3 }
 0x609   :  { %v776_v17 = vpop.permute.xlu0 %775 }
 0x60a   :  { %v778_v21 = vmul.f32 %v776_v17, %v773_v19 }
 0x60d   :  { %v780_v20 = vpop.permute.xlu0 %779 }
 0x60e   :  { %v782_v9 = vmul.f32 %v1034_v2, %v780_v20 }
 0x610   :  { %v783_v23 = vadd.f32 %v782_v9, %v778_v21 }
 0x612   :  { %870 = vrot.lane.b32.xlu1 %v783_v23, %s1043_s3  ;;  %796 = vrot.lane.b32.xlu0 %v783_v23, %s1042_s30 }
 0x684   :  { %v797_v24 = vpop.permute.xlu0 %796  ;;  %v871_v27 = vpop.permute.xlu1 %870 }
 0x685   :  { %996 = vmatmul.mubr.msk.f32.vlgmr.msra.gmra.mxu1 %vm57_vm1, %v797_v24 }
 0x745   :  { %v866_v26 = vpop.f32.mrf.mxu1 }
 0x746   :  { %v867_v0 = vadd.f32 %v894_v25, %v866_v26 }
 0x747   :  { %v997_v10 = vpop.f32.mrf.mxu1 }
 0x748   :  { %v874_v28 = vsel %vm873_vm7, %v867_v0, %v871_v27 }
 0x749   :  { %876 = vst.msk [vmem:[%s1331_s14] sm:$0xf] %vm875_vm8, %v874_v28 }

</bundles_post_ra>
